<compile_context>
chip_gen: v5e
topology: v5e:2x2
jax: 0.10.0
libtpu: 0.0.40
codegen_flags: <defaults>
</compile_context>

<pallas_src>
import functools

import jax
import jax.numpy as jnp
from jax.experimental import pallas as pl
from jax.experimental.pallas import tpu as pltpu


def _cdiv(a, b):
    return -(-a // b)


def _round_up(x, m):
    return ((x + m - 1) // m) * m


def _block_diag(blocks):
    """Block-diagonal of a list of equal-shaped 2-D arrays (static slices)."""
    n = len(blocks)
    if n == 1:
        return blocks[0]
    r, c = blocks[0].shape
    out = jnp.zeros((n * r, n * c), blocks[0].dtype)
    for j, b in enumerate(blocks):
        out = out.at[j * r:(j + 1) * r, j * c:(j + 1) * c].set(b)
    return out


def pack_mlp_params(w1, b1, w2, b2, mxu_dtype=None):
    """Build the lane-dense packed parameters ONCE (call outside the forward).

    w1: (E, H), b1: (H,), w2: (H, E), b2: (E,).  Weights are stored as
    (in, out), i.e. already W.T relative to nn.Linear's (out, in) layout.

    mxu_dtype=jnp.bfloat16 opts into bf16 MXU operands (f32 accumulation is
    kept inside the kernel) -- numerics-affecting, perf win on all TPU gens.
    """
    E, H = w1.shape
    pack = 128 // E if (E < 128 and 128 % E == 0) else 1
    w_dtype = mxu_dtype if mxu_dtype is not None else w1.dtype
    w1p = _block_diag([w1] * pack).astype(w_dtype)                  # (pack*E, pack*H)
    w2p = _block_diag([w2] * pack).astype(w_dtype)                  # (pack*H, pack*E)
    b1p = jnp.tile(b1, pack).reshape(1, pack * H).astype(jnp.float32)
    b2p = jnp.tile(b2, pack).reshape(1, pack * E).astype(jnp.float32)
    return w1p, b1p, w2p, b2p


def _mlp_kernel(x_ref, w1_ref, b1_ref, w2_ref, b2_ref, o_ref, *, mxu_dtype):
    # x_ref: (bm_p, Ep) lane-dense slab; w1_ref: (Ep, Hp); b1_ref: (1, Hp);
    # w2_ref: (Hp, Ep); b2_ref: (1, Ep).
    x = x_ref[...]
    if mxu_dtype is not None:
        x = x.astype(mxu_dtype)                    # bf16 MXU operands (opt-in)

    # fc1 on the MXU with f32 accumulation, then bias.
    h = jnp.dot(x, w1_ref[...], preferred_element_type=jnp.float32) + b1_ref[...]

    # tanh-approx GELU with the exact constants of the reference module
    # (tanh goes to the EUP slot -- essentially free next to the VPU work).
    g = 0.5 * h * (1.0 + jnp.tanh(0.7978845608 * (h + 0.044715 * (h * h * h))))

    if mxu_dtype is not None:
        g = g.astype(mxu_dtype)

    # fc2 + bias.
    out = jnp.dot(g, w2_ref[...], preferred_element_type=jnp.float32) + b2_ref[...]
    o_ref[...] = out.astype(o_ref.dtype)


@functools.partial(jax.jit, static_argnames=("block_rows",))
def mlp_forward(x, w1p, b1p, w2p, b2p, block_rows=4096):
    """x: (B, S, E). w1p/b1p/w2p/b2p: packed params from pack_mlp_params()."""
    B, S, E = x.shape
    M = B * S
    Ep, Hp = w1p.shape
    pack = Ep // E
    assert Ep == pack * E and w2p.shape == (Hp, Ep)

    # bf16-operand path is selected by the (static) packed-weight dtype.
    use_bf16 = jnp.dtype(w1p.dtype) == jnp.dtype(jnp.bfloat16)
    mxu_dtype = jnp.bfloat16 if use_bf16 else None

    # ---- tiling in the packed-row domain --------------------------------
    Mp = _round_up(_cdiv(M, pack), 8)              # packed rows, 8-row aligned
    bm_p = max(8, block_rows // pack)
    # Guarantee >=4 grid steps when M allows, so v7x's 2 TensorCores each
    # pipeline >=2 steps (prologue/epilogue overlapped per core).
    bm_p = min(bm_p, max(8, _round_up(_cdiv(Mp, 4), 8)))
    bm_p = min(_round_up(bm_p, 8), Mp)             # (8,128) rule; block <= array
    grid = (_cdiv(Mp, bm_p),)                      # ragged last block OK (writes masked)

    # ---- pack rows into a lane-dense (Mp, Ep) slab -----------------------
    x2d = x.reshape(M, E)
    pad_rows = Mp * pack - M                       # < 8*pack; 0 when M is aligned
    if pad_rows:
        x2d = jnp.pad(x2d, ((0, pad_rows), (0, 0)))
    xp = x2d.reshape(Mp, Ep)

    # ---- explicit scoped-VMEM budget (v5e default is only 16 MiB) --------
    w_bytes = jnp.dtype(w1p.dtype).itemsize
    vmem_est = (
        2 * 2 * bm_p * Ep * 4          # x / out tiles, double-buffered, f32
        + 2 * 2 * Ep * Hp * w_bytes    # W1 / W2 (grid-invariant), double-buffered
        + 2 * bm_p * Hp * 4            # h / g f32 intermediates
    )
    vmem_limit = int(min(max(2 * vmem_est, 32 * 1024 * 1024), 48 * 1024 * 1024))

    kernel = functools.partial(_mlp_kernel, mxu_dtype=mxu_dtype)

    outp = pl.pallas_call(
        kernel,
        out_shape=jax.ShapeDtypeStruct((Mp, Ep), x.dtype),
        grid=grid,
        in_specs=[
            pl.BlockSpec((bm_p, Ep), lambda i: (i, 0)),   # x rows tile (lane-dense)
            pl.BlockSpec((Ep, Hp), lambda i: (0, 0)),     # W1 (block-diag, grid-invariant)
            pl.BlockSpec((1, Hp), lambda i: (0, 0)),      # b1 (tiled)
            pl.BlockSpec((Hp, Ep), lambda i: (0, 0)),     # W2 (block-diag, grid-invariant)
            pl.BlockSpec((1, Ep), lambda i: (0, 0)),      # b2 (tiled)
        ],
        out_specs=pl.BlockSpec((bm_p, Ep), lambda i: (i, 0)),
        compiler_params=pltpu.CompilerParams(
            dimension_semantics=("parallel",),
            vmem_limit_bytes=vmem_limit,
        ),
    )(xp, w1p, b1p, w2p, b2p)

    # Unpack back to (B, S, E).  If the downstream op can consume the packed
    # (Mp, 128) slab directly, skip this to save an HBM round-trip.
    out2d = outp.reshape(Mp * pack, E)[:M]
    return out2d.reshape(B, S, E)


def reference_mlp(x, w1, b1, w2, b2):
    h = jnp.dot(x, w1) + b1
    g = 0.5 * h * (1.0 + jnp.tanh(0.7978845608 * (h + 0.044715 * h ** 3)))
    return jnp.dot(g, w2) + b2


if __name__ == "__main__":
    # cfg['emb_dim'] = 32  -> hidden = 128
    batch, seq, emb_dim = 2, 8, 32
    hidden = emb_dim * 4

    key = jax.random.PRNGKey(0)
    kx, kw1, kb1, kw2, kb2 = jax.random.split(key, 5)

    x = jax.random.normal(kx, (batch, seq, emb_dim), dtype=jnp.float32)
    # Deterministic synthetic params, stored as (in, out).
    w1 = jax.random.normal(kw1, (emb_dim, hidden), dtype=jnp.float32) * 0.02
    b1 = jax.random.normal(kb1, (hidden,), dtype=jnp.float32) * 0.02
    w2 = jax.random.normal(kw2, (hidden, emb_dim), dtype=jnp.float32) * 0.02
    b2 = jax.random.normal(kb2, (emb_dim,), dtype=jnp.float32) * 0.02

    ref = reference_mlp(x, w1, b1, w2, b2)

    # Default f32 path (matches the reference module's numerics).
    packed_f32 = pack_mlp_params(w1, b1, w2, b2)            # built once, reused
    out = jax.block_until_ready(mlp_forward(x, *packed_f32))
    assert out.shape == (batch, seq, emb_dim)
    assert jnp.allclose(out, ref, atol=1e-5, rtol=1e-5), "f32 path mismatch vs reference"

    # Opt-in bf16-MXU path (f32 accumulation) -- the explicit perf knob.
    packed_bf16 = pack_mlp_params(w1, b1, w2, b2, mxu_dtype=jnp.bfloat16)
    out_bf16 = jax.block_until_ready(mlp_forward(x, *packed_bf16))
    assert jnp.allclose(out_bf16, ref, atol=5e-3, rtol=5e-2), "bf16 path mismatch vs reference"

    print("KERNEL_OK")
</pallas_src>

<mosaic_0001>
module attributes {stable_mosaic.version = 11 : i64} {
  func.func @_mlp_kernel(%arg0: i32, %arg1: memref<8x128xf32, #tpu.memory_space<vmem>>, %arg2: memref<128x512xf32, #tpu.memory_space<vmem>>, %arg3: memref<1x512xf32, #tpu.memory_space<vmem>>, %arg4: memref<512x128xf32, #tpu.memory_space<vmem>>, %arg5: memref<1x128xf32, #tpu.memory_space<vmem>>, %arg6: memref<8x128xf32, #tpu.memory_space<vmem>>) attributes {dimension_semantics = [#tpu.dimension_semantics<parallel>], iteration_bounds = array<i64: 1>, scalar_prefetch = 0 : i64, scratch_operands = 0 : i64, tpu.core_type = #tpu.core_type<tc>, window_params = [{transform_indices = @transform_0, window_bounds = array<i64: 8, 128>}, {pipeline_mode = #tpu.pipeline_mode<synchronous>, transform_indices = @transform_1, window_bounds = array<i64: 128, 512>}, {pipeline_mode = #tpu.pipeline_mode<synchronous>, transform_indices = @transform_2, window_bounds = array<i64: 1, 512>}, {pipeline_mode = #tpu.pipeline_mode<synchronous>, transform_indices = @transform_3, window_bounds = array<i64: 512, 128>}, {pipeline_mode = #tpu.pipeline_mode<synchronous>, transform_indices = @transform_4, window_bounds = array<i64: 1, 128>}, {transform_indices = @transform_5, window_bounds = array<i64: 8, 128>}]} {
    %c0 = arith.constant 0 : index
    %c0_0 = arith.constant 0 : index
    %0 = vector.load %arg1[%c0, %c0_0] : memref<8x128xf32, #tpu.memory_space<vmem>>, vector<8x128xf32>
    %c0_1 = arith.constant 0 : index
    %c0_2 = arith.constant 0 : index
    %1 = vector.load %arg2[%c0_1, %c0_2] : memref<128x512xf32, #tpu.memory_space<vmem>>, vector<128x512xf32>
    %cst = arith.constant dense<0.000000e+00> : vector<8x512xf32>
    %2 = tpu.matmul %0, %1, %cst {dimension_numbers = #tpu.dot_dimension_numbers<[1], [0], [0], [1], [0, 0, 1, 1], [], []>} : vector<8x128xf32>, vector<128x512xf32>, vector<8x512xf32> -> vector<8x512xf32>
    %c0_3 = arith.constant 0 : index
    %c0_4 = arith.constant 0 : index
    %3 = vector.load %arg3[%c0_3, %c0_4] : memref<1x512xf32, #tpu.memory_space<vmem>>, vector<1x512xf32>
    %4 = vector.broadcast %3 : vector<1x512xf32> to vector<8x512xf32>
    %5 = arith.addf %2, %4 : vector<8x512xf32>
    %cst_5 = arith.constant 5.000000e-01 : f32
    %6 = vector.broadcast %cst_5 : f32 to vector<8x512xf32>
    %7 = arith.mulf %6, %5 : vector<8x512xf32>
    %8 = arith.mulf %5, %5 : vector<8x512xf32>
    %9 = arith.mulf %8, %5 : vector<8x512xf32>
    %cst_6 = arith.constant 4.471500e-02 : f32
    %10 = vector.broadcast %cst_6 : f32 to vector<8x512xf32>
    %11 = arith.mulf %10, %9 : vector<8x512xf32>
    %12 = arith.addf %5, %11 : vector<8x512xf32>
    %cst_7 = arith.constant 0.797884583 : f32
    %13 = vector.broadcast %cst_7 : f32 to vector<8x512xf32>
    %14 = arith.mulf %13, %12 : vector<8x512xf32>
    %15 = math.tanh %14 : vector<8x512xf32>
    %cst_8 = arith.constant 1.000000e+00 : f32
    %16 = vector.broadcast %cst_8 : f32 to vector<8x512xf32>
    %17 = arith.addf %16, %15 : vector<8x512xf32>
    %18 = arith.mulf %7, %17 : vector<8x512xf32>
    %c0_9 = arith.constant 0 : index
    %c0_10 = arith.constant 0 : index
    %19 = vector.load %arg4[%c0_9, %c0_10] : memref<512x128xf32, #tpu.memory_space<vmem>>, vector<512x128xf32>
    %cst_11 = arith.constant dense<0.000000e+00> : vector<8x128xf32>
    %20 = tpu.matmul %18, %19, %cst_11 {dimension_numbers = #tpu.dot_dimension_numbers<[1], [0], [0], [1], [0, 0, 1, 1], [], []>} : vector<8x512xf32>, vector<512x128xf32>, vector<8x128xf32> -> vector<8x128xf32>
    %c0_12 = arith.constant 0 : index
    %c0_13 = arith.constant 0 : index
    %21 = vector.load %arg5[%c0_12, %c0_13] : memref<1x128xf32, #tpu.memory_space<vmem>>, vector<1x128xf32>
    %22 = vector.broadcast %21 : vector<1x128xf32> to vector<8x128xf32>
    %23 = arith.addf %20, %22 : vector<8x128xf32>
    %c0_14 = arith.constant 0 : index
    %c0_15 = arith.constant 0 : index
    %24 = vector.load %arg6[%c0_14, %c0_15] : memref<8x128xf32, #tpu.memory_space<vmem>>, vector<8x128xf32>
    tpu.vector_store %arg6[%c0_14, %c0_15], %23 {strides = array<i32>} : memref<8x128xf32, #tpu.memory_space<vmem>>, vector<8x128xf32>,
    return
  }
  func.func @transform_0(%arg0: i32) -> (i32, i32) {
    %c0_i32 = arith.constant 0 : i32
    %c0_i32_0 = arith.constant 0 : i32
    return %arg0, %c0_i32 : i32, i32
  }
  func.func @transform_1(%arg0: i32) -> (i32, i32) {
    %c0_i32 = arith.constant 0 : i32
    %c0_i32_0 = arith.constant 0 : i32
    %c0_i32_1 = arith.constant 0 : i32
    return %c0_i32, %c0_i32_0 : i32, i32
  }
  func.func @transform_2(%arg0: i32) -> (i32, i32) {
    %c0_i32 = arith.constant 0 : i32
    %c0_i32_0 = arith.constant 0 : i32
    %c0_i32_1 = arith.constant 0 : i32
    return %c0_i32, %c0_i32_0 : i32, i32
  }
  func.func @transform_3(%arg0: i32) -> (i32, i32) {
    %c0_i32 = arith.constant 0 : i32
    %c0_i32_0 = arith.constant 0 : i32
    %c0_i32_1 = arith.constant 0 : i32
    return %c0_i32, %c0_i32_0 : i32, i32
  }
  func.func @transform_4(%arg0: i32) -> (i32, i32) {
    %c0_i32 = arith.constant 0 : i32
    %c0_i32_0 = arith.constant 0 : i32
    %c0_i32_1 = arith.constant 0 : i32
    return %c0_i32, %c0_i32_0 : i32, i32
  }
  func.func @transform_5(%arg0: i32) -> (i32, i32) {
    %c0_i32 = arith.constant 0 : i32
    %c0_i32_0 = arith.constant 0 : i32
    return %arg0, %c0_i32 : i32, i32
  }
}

</mosaic_0001>

<bundles_post_ra>
// kernel: mlp_forward.1
= control target key start
LH: loop header
LB: loop body
LE: loop exit
PB: predicated region body
PF: predicated region fallthrough
CT: control target
= control target key end

     0   :  { %10 = vsyncpa [#allocation3], 0  ;;  %s519_s0 = inlined_call_operand.vmem [shape: f32[8,128], index: 0, kind: input, shape index: {}]   ;;  %s520_s1 = inlined_call_operand.hbm [shape: f32[128,512], index: 1, kind: input, shape index: {}]   ;;  %s521_s2 = inlined_call_operand.vmem [shape: f32[1,512], index: 2, kind: input, shape index: {}]   ;;  %s522_s3 = inlined_call_operand.hbm [shape: f32[512,128], index: 3, kind: input, shape index: {}]   ;;  %s523_s4 = inlined_call_operand.vmem [shape: f32[1,128], index: 4, kind: input, shape index: {}]   ;;  %s524_s5 = inlined_call_operand.vmem [shape: f32[8,128], index: 5, kind: output, shape index: {}]  }
   0x1   :  { %s18_s20 = sshll.u32 %s520_s1, 4  ;;  %s19_s20 = int_to_ptr.hbm [resolvable:$true] %s18_s20 }
   0x2   :  { %11 = vsyncpa [#allocation5], 0  ;;  %s465_s21 = smov [#allocation2]   ;;  %s33_s25 = sshll.u32 %s522_s3, 4  ;;  %s34_s25 = int_to_ptr.hbm [resolvable:$true] %s33_s25 }
   0x3   :  { %s20_s22 = sshll.u32 %s465_s21, 4  ;;  %s466_s26 = smov 512   ;;  %s21_s22 = int_to_ptr.vmem [resolvable:$true] %s20_s22 }
   0x4   :  { %s467_s27 = smov 32   ;;  %s468_s28 = smov [#allocation4]  }
   0x5   :  { %26 = dma.hbm_to_vmem [thread:$0]  %s19_s20, 8192, %s21_s22, [#allocation3], %s466_s26, %s466_s26, %s467_s27  }
   0x6   :  { %s35_s29 = sshll.u32 %s468_s28, 4  ;;  %s469_s30 = smov 128   ;;  %s36_s29 = int_to_ptr.vmem [resolvable:$true] %s35_s29 }
   0x7   :  { %s470_s6 = smov 8  }
   0x8   :  { %41 = dma.hbm_to_vmem [thread:$0]  %s34_s25, 8192, %s36_s29, [#allocation5], %s469_s30, %s469_s30, %s470_s6  }
   0x9   :  { %461 = dma.done.wait [#allocation3], 8192  }
   0xa   :  { %462 = vsyncadd [#allocation3], 4294959104 }
   0xb   :  { %463 = dma.done.wait [#allocation5], 8192  }
   0xc   :  { %464 = vsyncadd [#allocation5], 4294959104  ;;  %v113_v0 = vld [vmem:[#allocation2 + $0x1e0] sm:$0xff]  ;;  %v114_v1 = vld [vmem:[#allocation2 + $0x1e8] sm:$0xff] }
   0xd   :  { %v115_v2 = vld [vmem:[#allocation2 + $0x1f0] sm:$0xff]  ;;  %127 = vmatpush.msra.mxu0 %v113_v0  ;;  %147 = vmatpush.msra.mxu1 %v114_v1  ;;  %v116_v3 = vld [vmem:[#allocation2 + $0x1f8] sm:$0xff]  ;;  %v109_v4 = vld [vmem:[#allocation2 + $0x1c0] sm:$0xff] }
   0xe   :  { %v110_v5 = vld [vmem:[#allocation2 + $0x1c8] sm:$0xff]  ;;  %167 = vmatpush.msra.mxu2 %v115_v2  ;;  %187 = vmatpush.msra.mxu3 %v116_v3  ;;  %v111_v6 = vld [vmem:[#allocation2 + $0x1d0] sm:$0xff]  ;;  %v112_v7 = vld [vmem:[#allocation2 + $0x1d8] sm:$0xff] }
   0xf   :  { %v105_v8 = vld [vmem:[#allocation2 + $0x1a0] sm:$0xff]  ;;  %128 = vmatpush.msra.mxu0 %v109_v4  ;;  %148 = vmatpush.msra.mxu1 %v110_v5  ;;  %v106_v9 = vld [vmem:[#allocation2 + $0x1a8] sm:$0xff]  ;;  %v107_v10 = vld [vmem:[#allocation2 + $0x1b0] sm:$0xff] }
  0x10   :  { %v108_v11 = vld [vmem:[#allocation2 + $0x1b8] sm:$0xff]  ;;  %168 = vmatpush.msra.mxu2 %v111_v6  ;;  %188 = vmatpush.msra.mxu3 %v112_v7  ;;  %v101_v12 = vld [vmem:[#allocation2 + $0x180] sm:$0xff]  ;;  %v102_v13 = vld [vmem:[#allocation2 + $0x188] sm:$0xff] }
  0x11   :  { %129 = vmatpush.msra.mxu0 %v105_v8  ;;  %149 = vmatpush.msra.mxu1 %v106_v9  ;;  %v103_v14 = vld [vmem:[#allocation2 + $0x190] sm:$0xff]  ;;  %v104_v15 = vld [vmem:[#allocation2 + $0x198] sm:$0xff]  ;;  %v97_v16 = vld [vmem:[#allocation2 + $0x160] sm:$0xff] }
  0x12   :  { %169 = vmatpush.msra.mxu2 %v107_v10  ;;  %189 = vmatpush.msra.mxu3 %v108_v11  ;;  %v98_v17 = vld [vmem:[#allocation2 + $0x168] sm:$0xff]  ;;  %v99_v18 = vld [vmem:[#allocation2 + $0x170] sm:$0xff]  ;;  %v100_v19 = vld [vmem:[#allocation2 + $0x178] sm:$0xff] }
  0x13   :  { %130 = vmatpush.msra.mxu0 %v101_v12  ;;  %150 = vmatpush.msra.mxu1 %v102_v13  ;;  %v93_v20 = vld [vmem:[#allocation2 + $0x140] sm:$0xff]  ;;  %v94_v21 = vld [vmem:[#allocation2 + $0x148] sm:$0xff]  ;;  %v95_v22 = vld [vmem:[#allocation2 + $0x150] sm:$0xff] }
  0x14   :  { %170 = vmatpush.msra.mxu2 %v103_v14  ;;  %190 = vmatpush.msra.mxu3 %v104_v15  ;;  %v96_v23 = vld [vmem:[#allocation2 + $0x158] sm:$0xff]  ;;  %v89_v24 = vld [vmem:[#allocation2 + $0x120] sm:$0xff]  ;;  %v90_v25 = vld [vmem:[#allocation2 + $0x128] sm:$0xff] }
  0x15   :  { %131 = vmatpush.msra.mxu0 %v97_v16  ;;  %151 = vmatpush.msra.mxu1 %v98_v17  ;;  %v91_v26 = vld [vmem:[#allocation2 + $0x130] sm:$0xff]  ;;  %v92_v27 = vld [vmem:[#allocation2 + $0x138] sm:$0xff]  ;;  %v85_v28 = vld [vmem:[#allocation2 + $0x100] sm:$0xff] }
  0x16   :  { %171 = vmatpush.msra.mxu2 %v99_v18  ;;  %191 = vmatpush.msra.mxu3 %v100_v19  ;;  %v86_v29 = vld [vmem:[#allocation2 + $0x108] sm:$0xff]  ;;  %v87_v30 = vld [vmem:[#allocation2 + $0x110] sm:$0xff]  ;;  %v88_v31 = vld [vmem:[#allocation2 + $0x118] sm:$0xff] }
  0x17   :  { %132 = vmatpush.msra.mxu0 %v93_v20  ;;  %152 = vmatpush.msra.mxu1 %v94_v21  ;;  %v81_v32 = vld [vmem:[#allocation2 + $0xe0] sm:$0xff]  ;;  %v82_v33 = vld [vmem:[#allocation2 + $0xe8] sm:$0xff]  ;;  %v83_v34 = vld [vmem:[#allocation2 + $0xf0] sm:$0xff] }
  0x18   :  { %172 = vmatpush.msra.mxu2 %v95_v22  ;;  %192 = vmatpush.msra.mxu3 %v96_v23  ;;  %v84_v35 = vld [vmem:[#allocation2 + $0xf8] sm:$0xff]  ;;  %v77_v36 = vld [vmem:[#allocation2 + $0xc0] sm:$0xff]  ;;  %v78_v37 = vld [vmem:[#allocation2 + $0xc8] sm:$0xff] }
  0x19   :  { %133 = vmatpush.msra.mxu0 %v89_v24  ;;  %153 = vmatpush.msra.mxu1 %v90_v25  ;;  %v79_v38 = vld [vmem:[#allocation2 + $0xd0] sm:$0xff]  ;;  %v80_v39 = vld [vmem:[#allocation2 + $0xd8] sm:$0xff]  ;;  %v73_v40 = vld [vmem:[#allocation2 + $0xa0] sm:$0xff] }
  0x1a   :  { %173 = vmatpush.msra.mxu2 %v91_v26  ;;  %193 = vmatpush.msra.mxu3 %v92_v27  ;;  %v74_v41 = vld [vmem:[#allocation2 + $0xa8] sm:$0xff]  ;;  %v75_v42 = vld [vmem:[#allocation2 + $0xb0] sm:$0xff]  ;;  %v76_v43 = vld [vmem:[#allocation2 + $0xb8] sm:$0xff] }
  0x1b   :  { %134 = vmatpush.msra.mxu0 %v85_v28  ;;  %154 = vmatpush.msra.mxu1 %v86_v29  ;;  %v69_v44 = vld [vmem:[#allocation2 + $0x80] sm:$0xff]  ;;  %v70_v45 = vld [vmem:[#allocation2 + $0x88] sm:$0xff]  ;;  %v71_v46 = vld [vmem:[#allocation2 + $0x90] sm:$0xff] }
  0x1c   :  { %174 = vmatpush.msra.mxu2 %v87_v30  ;;  %194 = vmatpush.msra.mxu3 %v88_v31  ;;  %v72_v47 = vld [vmem:[#allocation2 + $0x98] sm:$0xff]  ;;  %v65_v48 = vld [vmem:[#allocation2 + $0x60] sm:$0xff]  ;;  %v66_v49 = vld [vmem:[#allocation2 + $0x68] sm:$0xff] }
  0x1d   :  { %135 = vmatpush.msra.mxu0 %v81_v32  ;;  %155 = vmatpush.msra.mxu1 %v82_v33  ;;  %v67_v50 = vld [vmem:[#allocation2 + $0x70] sm:$0xff]  ;;  %v68_v51 = vld [vmem:[#allocation2 + $0x78] sm:$0xff]  ;;  %v61_v52 = vld [vmem:[#allocation2 + $0x40] sm:$0xff] }
  0x1e   :  { %175 = vmatpush.msra.mxu2 %v83_v34  ;;  %195 = vmatpush.msra.mxu3 %v84_v35  ;;  %v62_v53 = vld [vmem:[#allocation2 + $0x48] sm:$0xff]  ;;  %v63_v54 = vld [vmem:[#allocation2 + $0x50] sm:$0xff]  ;;  %v64_v55 = vld [vmem:[#allocation2 + $0x58] sm:$0xff] }
  0x1f   :  { %136 = vmatpush.msra.mxu0 %v77_v36  ;;  %156 = vmatpush.msra.mxu1 %v78_v37  ;;  %v57_v56 = vld [vmem:[#allocation2 + $0x20] sm:$0xff]  ;;  %v58_v57 = vld [vmem:[#allocation2 + $0x28] sm:$0xff]  ;;  %v59_v58 = vld [vmem:[#allocation2 + $0x30] sm:$0xff] }
  0x20   :  { %176 = vmatpush.msra.mxu2 %v79_v38  ;;  %196 = vmatpush.msra.mxu3 %v80_v39  ;;  %v60_v59 = vld [vmem:[#allocation2 + $0x38] sm:$0xff]  ;;  %v53_v60 = vld [vmem:[#allocation2] sm:$0xff]  ;;  %v54_v61 = vld [vmem:[#allocation2 + $0x8] sm:$0xff] }
  0x21   :  { %137 = vmatpush.msra.mxu0 %v73_v40  ;;  %157 = vmatpush.msra.mxu1 %v74_v41  ;;  %v55_v62 = vld [vmem:[#allocation2 + $0x10] sm:$0xff]  ;;  %v56_v63 = vld [vmem:[#allocation2 + $0x18] sm:$0xff]  ;;  %v52_v0 = vld [vmem:[%s519_s0] sm:$0xff] }
  0x22   :  { %177 = vmatpush.msra.mxu2 %v75_v42  ;;  %197 = vmatpush.msra.mxu3 %v76_v43  ;;  %v258_v1 = vld [vmem:[#allocation4 + $0x78] sm:$0xff]  ;;  %v257_v5 = vld [vmem:[#allocation4 + $0x70] sm:$0xff]  ;;  %v256_v7 = vld [vmem:[#allocation4 + $0x68] sm:$0xff] }
  0x23   :  { %138 = vmatpush.msra.mxu0 %v69_v44  ;;  %158 = vmatpush.msra.mxu1 %v70_v45  ;;  %v274_v2 = vld [vmem:[#allocation4 + $0xf8] sm:$0xff]  ;;  %v273_v6 = vld [vmem:[#allocation4 + $0xf0] sm:$0xff]  ;;  %v272_v8 = vld [vmem:[#allocation4 + $0xe8] sm:$0xff] }
  0x24   :  { %178 = vmatpush.msra.mxu2 %v71_v46  ;;  %198 = vmatpush.msra.mxu3 %v72_v47  ;;  %v290_v3 = vld [vmem:[#allocation4 + $0x178] sm:$0xff]  ;;  %v255_v9 = vld [vmem:[#allocation4 + $0x60] sm:$0xff]  ;;  %v289_v13 = vld [vmem:[#allocation4 + $0x170] sm:$0xff] }
  0x25   :  { %139 = vmatpush.msra.mxu0 %v65_v48  ;;  %159 = vmatpush.msra.mxu1 %v66_v49  ;;  %v306_v4 = vld [vmem:[#allocation4 + $0x1f8] sm:$0xff]  ;;  %v271_v10 = vld [vmem:[#allocation4 + $0xe0] sm:$0xff]  ;;  %v305_v14 = vld [vmem:[#allocation4 + $0x1f0] sm:$0xff] }
  0x26   :  { %179 = vmatpush.msra.mxu2 %v67_v50  ;;  %199 = vmatpush.msra.mxu3 %v68_v51  ;;  %v254_v11 = vld [vmem:[#allocation4 + $0x58] sm:$0xff]  ;;  %v253_v15 = vld [vmem:[#allocation4 + $0x50] sm:$0xff]  ;;  %v288_v17 = vld [vmem:[#allocation4 + $0x168] sm:$0xff] }
  0x27   :  { %140 = vmatpush.msra.mxu0 %v61_v52  ;;  %160 = vmatpush.msra.mxu1 %v62_v53  ;;  %v270_v12 = vld [vmem:[#allocation4 + $0xd8] sm:$0xff]  ;;  %v269_v16 = vld [vmem:[#allocation4 + $0xd0] sm:$0xff]  ;;  %v304_v18 = vld [vmem:[#allocation4 + $0x1e8] sm:$0xff] }
  0x28   :  { %180 = vmatpush.msra.mxu2 %v63_v54  ;;  %200 = vmatpush.msra.mxu3 %v64_v55  ;;  %v252_v19 = vld [vmem:[#allocation4 + $0x48] sm:$0xff]  ;;  %v287_v21 = vld [vmem:[#allocation4 + $0x160] sm:$0xff]  ;;  %v286_v25 = vld [vmem:[#allocation4 + $0x158] sm:$0xff] }
  0x29   :  { %141 = vmatpush.msra.mxu0 %v57_v56  ;;  %161 = vmatpush.msra.mxu1 %v58_v57  ;;  %v268_v20 = vld [vmem:[#allocation4 + $0xc8] sm:$0xff]  ;;  %v303_v22 = vld [vmem:[#allocation4 + $0x1e0] sm:$0xff]  ;;  %v302_v26 = vld [vmem:[#allocation4 + $0x1d8] sm:$0xff] }
  0x2a   :  { %181 = vmatpush.msra.mxu2 %v59_v58  ;;  %201 = vmatpush.msra.mxu3 %v60_v59  ;;  %v251_v23 = vld [vmem:[#allocation4 + $0x40] sm:$0xff]  ;;  %v250_v27 = vld [vmem:[#allocation4 + $0x38] sm:$0xff]  ;;  %v285_v29 = vld [vmem:[#allocation4 + $0x150] sm:$0xff] }
  0x2b   :  { %142 = vmatpush.msra.mxu0 %v53_v60  ;;  %162 = vmatpush.msra.mxu1 %v54_v61  ;;  %v267_v24 = vld [vmem:[#allocation4 + $0xc0] sm:$0xff]  ;;  %v266_v28 = vld [vmem:[#allocation4 + $0xb8] sm:$0xff]  ;;  %v301_v30 = vld [vmem:[#allocation4 + $0x1d0] sm:$0xff] }
  0x2c   :  { %182 = vmatpush.msra.mxu2 %v55_v62  ;;  %202 = vmatpush.msra.mxu3 %v56_v63  ;;  %v249_v31 = vld [vmem:[#allocation4 + $0x30] sm:$0xff]  ;;  %v284_v33 = vld [vmem:[#allocation4 + $0x148] sm:$0xff]  ;;  %v283_v37 = vld [vmem:[#allocation4 + $0x140] sm:$0xff] }
  0x2d   :  { %143 = vmatmul.f32.vlgmr.msra.gmra.mxu0 %v52_v0  ;;  %163 = vmatmul.f32.vlgmr.msra.gmra.mxu1 %v52_v0  ;;  %v265_v32 = vld [vmem:[#allocation4 + $0xb0] sm:$0xff]  ;;  %v300_v34 = vld [vmem:[#allocation4 + $0x1c8] sm:$0xff]  ;;  %v299_v38 = vld [vmem:[#allocation4 + $0x1c0] sm:$0xff] }
  0x2e   :  { %183 = vmatmul.f32.vlgmr.msra.gmra.mxu2 %v52_v0  ;;  %203 = vmatmul.f32.vlgmr.msra.gmra.mxu3 %v52_v0  ;;  %v248_v35 = vld [vmem:[#allocation4 + $0x28] sm:$0xff]  ;;  %v247_v39 = vld [vmem:[#allocation4 + $0x20] sm:$0xff]  ;;  %v282_v41 = vld [vmem:[#allocation4 + $0x138] sm:$0xff] }
  0x2f   :  { %311 = vmatpush.msrb.mxu0 %v258_v1  ;;  %331 = vmatpush.msrb.mxu1 %v274_v2  ;;  %v264_v36 = vld [vmem:[#allocation4 + $0xa8] sm:$0xff]  ;;  %v263_v40 = vld [vmem:[#allocation4 + $0xa0] sm:$0xff]  ;;  %v298_v42 = vld [vmem:[#allocation4 + $0x1b8] sm:$0xff] }
  0x30   :  { %351 = vmatpush.msrb.mxu2 %v290_v3  ;;  %371 = vmatpush.msrb.mxu3 %v306_v4  ;;  %v246_v43 = vld [vmem:[#allocation4 + $0x18] sm:$0xff]  ;;  %v281_v45 = vld [vmem:[#allocation4 + $0x130] sm:$0xff]  ;;  %v280_v49 = vld [vmem:[#allocation4 + $0x128] sm:$0xff] }
  0x31   :  { %312 = vmatpush.msrb.mxu0 %v257_v5  ;;  %332 = vmatpush.msrb.mxu1 %v273_v6  ;;  %v262_v44 = vld [vmem:[#allocation4 + $0x98] sm:$0xff]  ;;  %v297_v46 = vld [vmem:[#allocation4 + $0x1b0] sm:$0xff]  ;;  %v296_v50 = vld [vmem:[#allocation4 + $0x1a8] sm:$0xff] }
  0x32   :  { %352 = vmatpush.msrb.mxu2 %v289_v13  ;;  %372 = vmatpush.msrb.mxu3 %v305_v14  ;;  %v245_v47 = vld [vmem:[#allocation4 + $0x10] sm:$0xff]  ;;  %v244_v51 = vld [vmem:[#allocation4 + $0x8] sm:$0xff]  ;;  %v279_v53 = vld [vmem:[#allocation4 + $0x120] sm:$0xff] }
  0x33   :  { %313 = vmatpush.msrb.mxu0 %v256_v7  ;;  %333 = vmatpush.msrb.mxu1 %v272_v8  ;;  %v261_v48 = vld [vmem:[#allocation4 + $0x90] sm:$0xff]  ;;  %v260_v52 = vld [vmem:[#allocation4 + $0x88] sm:$0xff]  ;;  %v295_v54 = vld [vmem:[#allocation4 + $0x1a0] sm:$0xff] }
  0x34   :  { %353 = vmatpush.msrb.mxu2 %v288_v17  ;;  %373 = vmatpush.msrb.mxu3 %v304_v18  ;;  %v243_v55 = vld [vmem:[#allocation4] sm:$0xff]  ;;  %v278_v57 = vld [vmem:[#allocation4 + $0x118] sm:$0xff]  ;;  %v277_v59 = vld [vmem:[#allocation4 + $0x110] sm:$0xff] }
  0x35   :  { %314 = vmatpush.msrb.mxu0 %v255_v9  ;;  %334 = vmatpush.msrb.mxu1 %v271_v10  ;;  %v259_v56 = vld [vmem:[#allocation4 + $0x80] sm:$0xff]  ;;  %v294_v58 = vld [vmem:[#allocation4 + $0x198] sm:$0xff]  ;;  %v293_v60 = vld [vmem:[#allocation4 + $0x190] sm:$0xff] }
  0x36   :  { %354 = vmatpush.msrb.mxu2 %v287_v21  ;;  %374 = vmatpush.msrb.mxu3 %v303_v22  ;;  %v117_v61 = vld [vmem:[%s521_s2] sm:$0xf]  ;;  %v276_v62 = vld [vmem:[#allocation4 + $0x108] sm:$0xff] }
  0x37   :  { %315 = vmatpush.msrb.mxu0 %v254_v11  ;;  %335 = vmatpush.msrb.mxu1 %v270_v12  ;;  %v292_v63 = vld [vmem:[#allocation4 + $0x188] sm:$0xff]  ;;  %v275_v0 = vld [vmem:[#allocation4 + $0x100] sm:$0xff]  ;;  %v119_v2 = vperm.slane %v117_v61, 0  ;;  %v120_v3 = vperm.slane %v117_v61, 1  ;;  %v121_v10 = vperm.slane %v117_v61, 2  ;;  %v122_v11 = vperm.slane %v117_v61, 3 }
  0x38   :  { %355 = vmatpush.msrb.mxu2 %v286_v25  ;;  %375 = vmatpush.msrb.mxu3 %v302_v26  ;;  %v291_v1 = vld [vmem:[#allocation4 + $0x180] sm:$0xff] }
  0x39   :  { %316 = vmatpush.msrb.mxu0 %v253_v15  ;;  %336 = vmatpush.msrb.mxu1 %v269_v16 }
  0x3a   :  { %356 = vmatpush.msrb.mxu2 %v285_v29  ;;  %376 = vmatpush.msrb.mxu3 %v301_v30 }
  0x3b   :  { %317 = vmatpush.msrb.mxu0 %v252_v19  ;;  %337 = vmatpush.msrb.mxu1 %v268_v20 }
  0x3c   :  { %357 = vmatpush.msrb.mxu2 %v284_v33  ;;  %377 = vmatpush.msrb.mxu3 %v300_v34 }
  0x3d   :  { %318 = vmatpush.msrb.mxu0 %v251_v23  ;;  %338 = vmatpush.msrb.mxu1 %v267_v24 }
  0x3e   :  { %358 = vmatpush.msrb.mxu2 %v283_v37  ;;  %378 = vmatpush.msrb.mxu3 %v299_v38 }
  0x3f   :  { %319 = vmatpush.msrb.mxu0 %v250_v27  ;;  %339 = vmatpush.msrb.mxu1 %v266_v28 }
  0x40   :  { %359 = vmatpush.msrb.mxu2 %v282_v41  ;;  %379 = vmatpush.msrb.mxu3 %v298_v42 }
  0x41   :  { %320 = vmatpush.msrb.mxu0 %v249_v31  ;;  %340 = vmatpush.msrb.mxu1 %v265_v32 }
  0x42   :  { %360 = vmatpush.msrb.mxu2 %v281_v45  ;;  %380 = vmatpush.msrb.mxu3 %v297_v46 }
  0x43   :  { %321 = vmatpush.msrb.mxu0 %v248_v35  ;;  %341 = vmatpush.msrb.mxu1 %v264_v36 }
  0x44   :  { %361 = vmatpush.msrb.mxu2 %v280_v49  ;;  %381 = vmatpush.msrb.mxu3 %v296_v50  ;;  %v404_v50 = vld [vmem:[%s523_s4] ss:$0 sm:$0xff] }
  0x45   :  { %322 = vmatpush.msrb.mxu0 %v247_v39  ;;  %342 = vmatpush.msrb.mxu1 %v263_v40 }
  0x46   :  { %362 = vmatpush.msrb.mxu2 %v279_v53  ;;  %382 = vmatpush.msrb.mxu3 %v295_v54 }
  0x47   :  { %323 = vmatpush.msrb.mxu0 %v246_v43  ;;  %343 = vmatpush.msrb.mxu1 %v262_v44 }
  0x48   :  { %363 = vmatpush.msrb.mxu2 %v278_v57  ;;  %383 = vmatpush.msrb.mxu3 %v294_v58 }
  0x49   :  { %324 = vmatpush.msrb.mxu0 %v245_v47  ;;  %344 = vmatpush.msrb.mxu1 %v261_v48 }
  0x4a   :  { %364 = vmatpush.msrb.mxu2 %v277_v59  ;;  %384 = vmatpush.msrb.mxu3 %v293_v60 }
  0x4b   :  { %325 = vmatpush.msrb.mxu0 %v244_v51  ;;  %345 = vmatpush.msrb.mxu1 %v260_v52 }
  0x4c   :  { %365 = vmatpush.msrb.mxu2 %v276_v62  ;;  %385 = vmatpush.msrb.mxu3 %v292_v63 }
  0x4d   :  { %326 = vmatpush.msrb.mxu0 %v243_v55  ;;  %346 = vmatpush.msrb.mxu1 %v259_v56 }
  0x4e   :  { %366 = vmatpush.msrb.mxu2 %v275_v0  ;;  %386 = vmatpush.msrb.mxu3 %v291_v1 }
  0xaa   :  { %v144_v4 = vpop.f32.mrf.mxu0  ;;  %v164_v5 = vpop.f32.mrf.mxu1 }
  0xab   :  { %v145_v6 = vadd.f32 %v144_v4, %v119_v2  ;;  %v165_v7 = vadd.f32 %v164_v5, %v120_v3 }
  0xad   :  { %v211_v8 = vmul.f32 %v145_v6, %v145_v6  ;;  %v212_v9 = vmul.f32 %v165_v7, %v165_v7  ;;  %v207_v36 = vmul.f32 0.5, %v145_v6  ;;  %v208_v38 = vmul.f32 0.5, %v165_v7 }
  0xaf   :  { %v215_v12 = vmul.f32 %v211_v8, %v145_v6  ;;  %v216_v13 = vmul.f32 %v212_v9, %v165_v7 }
  0xb1   :  { %v219_v14 = vmul.f32 0.044715, %v215_v12  ;;  %v220_v15 = vmul.f32 0.044715, %v216_v13  ;;  %v184_v16 = vpop.f32.mrf.mxu2  ;;  %v204_v17 = vpop.f32.mrf.mxu3 }
  0xb2   :  { %v185_v18 = vadd.f32 %v184_v16, %v121_v10  ;;  %v205_v19 = vadd.f32 %v204_v17, %v122_v11 }
  0xb3   :  { %v223_v20 = vadd.f32 %v219_v14, %v145_v6  ;;  %v224_v21 = vadd.f32 %v220_v15, %v165_v7 }
  0xb4   :  { %v213_v22 = vmul.f32 %v185_v18, %v185_v18  ;;  %v214_v23 = vmul.f32 %v205_v19, %v205_v19  ;;  %v209_v44 = vmul.f32 0.5, %v185_v18  ;;  %v210_v46 = vmul.f32 0.5, %v205_v19 }
  0xb5   :  { %v227_v24 = vmul.f32 0.7978846, %v223_v20  ;;  %v228_v25 = vmul.f32 0.7978846, %v224_v21 }
  0xb6   :  { %v217_v26 = vmul.f32 %v213_v22, %v185_v18  ;;  %v218_v27 = vmul.f32 %v214_v23, %v205_v19 }
  0xb7   :  { %405 = vtanh.f32 %v227_v24 }
  0xb8   :  { %v221_v28 = vmul.f32 0.044715, %v217_v26  ;;  %v222_v29 = vmul.f32 0.044715, %v218_v27  ;;  %407 = vtanh.f32 %v228_v25 }
  0xba   :  { %v225_v30 = vadd.f32 %v221_v28, %v185_v18  ;;  %v226_v31 = vadd.f32 %v222_v29, %v205_v19 }
  0xbc   :  { %v229_v32 = vmul.f32 0.7978846, %v225_v30  ;;  %v230_v33 = vmul.f32 0.7978846, %v226_v31 }
  0xbd   :  { %v406_v34 = vpop.eup %405 }
  0xbe   :  { %v408_v35 = vpop.eup %407  ;;  %v235_v37 = vadd.f32 1.0, %v406_v34  ;;  %409 = vtanh.f32 %v229_v32 }
  0xbf   :  { %v236_v39 = vadd.f32 1.0, %v408_v35  ;;  %411 = vtanh.f32 %v230_v33 }
  0xc0   :  { %v239_v40 = vmul.f32 %v235_v37, %v207_v36 }
  0xc1   :  { %v240_v41 = vmul.f32 %v236_v39, %v208_v38 }
  0xc2   :  { %327 = vmatmul.f32.vlgmr.msrb.gmra.mxu0 %v239_v40 }
  0xc3   :  { %347 = vmatmul.f32.vlgmr.msrb.gmra.mxu1 %v240_v41 }
  0xc4   :  { %v410_v42 = vpop.eup %409 }
  0xc5   :  { %v412_v43 = vpop.eup %411  ;;  %v237_v45 = vadd.f32 1.0, %v410_v42 }
  0xc6   :  { %v238_v47 = vadd.f32 1.0, %v412_v43 }
  0xc7   :  { %v241_v48 = vmul.f32 %v237_v45, %v209_v44 }
  0xc8   :  { %v242_v49 = vmul.f32 %v238_v47, %v210_v46 }
  0xc9   :  { %367 = vmatmul.f32.vlgmr.msrb.gmra.mxu2 %v241_v48 }
  0xca   :  { %387 = vmatmul.f32.vlgmr.msrb.gmra.mxu3 %v242_v49 }
 0x13f   :  { %v328_v51 = vpop.f32.mrf.mxu0 }
 0x140   :  { %v329_v52 = vadd.f32 %v404_v50, %v328_v51  ;;  %v348_v53 = vpop.f32.mrf.mxu1 }
 0x142   :  { %v349_v54 = vadd.f32 %v348_v53, %v329_v52 }
 0x14c   :  { %v368_v55 = vpop.f32.mrf.mxu2 }
 0x14d   :  { %v369_v56 = vadd.f32 %v368_v55, %v349_v54  ;;  %v388_v57 = vpop.f32.mrf.mxu3 }
 0x14f   :  { %v389_v58 = vadd.f32 %v388_v57, %v369_v56 }
 0x151   :  { %391 = vst [vmem:[%s524_s5] sm:$0xff] %v389_v58 }
 0x152   :  { %396 = vsyncpa [#allocation3], 1 }
 0x153   :  { %397 = vsyncpa [#allocation5], 1 }

</bundles_post_ra>
